<compile_context>
chip_gen: v7x
topology: tpu7x:2x2x1
jax: 0.10.0
libtpu: 0.0.40
codegen_flags: <defaults>
</compile_context>

<pallas_src>
import math
import jax
import jax.numpy as jnp
from jax.experimental import pallas as pl
from jax.experimental.pallas import tpu as pltpu

GLOBAL_HIDDEN = 128   # module-level `hidden_size`, used only for score scaling
NUM_LAYERS = 3


def attention_model_kernel(x_ref, wqkv_ref, bqkv_ref, wfc_ref, bfc_ref, out_ref):
    Bt, S, _ = x_ref.shape
    H = wfc_ref.shape[0]
    scale = 1.0 / math.sqrt(GLOBAL_HIDDEN)

    x = x_ref[...].astype(jnp.float32)                       # (Bt, S, E)

    for l in range(NUM_LAYERS):                              # static, unrolled
        # Fused QKV projection: one (Bt*S, Ein) x (Ein, 3H) matmul per layer.
        # The (Bt, S, .) <-> (Bt*S, .) reshapes are layout-preserving (S == 8
        # sublanes per batch row), so they cost nothing.
        x2d = x.reshape(Bt * S, x.shape[-1])                  # (Bt*S, Ein)
        qkv2d = jnp.dot(x2d, wqkv_ref[l],
                        preferred_element_type=jnp.float32) + bqkv_ref[l]
        qkv = qkv2d.reshape(Bt, S, 3 * H)                     # (Bt, S, 3H)
        q = qkv[:, :, 0 * H:1 * H]
        k = qkv[:, :, 1 * H:2 * H]
        v = qkv[:, :, 2 * H:3 * H]

        # Batched q @ k^T via transposed contraction (no explicit k.T).
        scores = jnp.einsum("bqd,bkd->bqk", q, k,
                            preferred_element_type=jnp.float32) * scale  # (Bt,S,S)
        # Numerically-stable softmax over the last axis (== F.softmax(dim=-1)).
        scores = scores - jnp.max(scores, axis=-1, keepdims=True)
        e = jnp.exp(scores)
        attn = e / jnp.sum(e, axis=-1, keepdims=True)         # exact division
        x = jnp.einsum("bqk,bkd->bqd", attn, v,
                       preferred_element_type=jnp.float32)    # (Bt, S, H)

    pooled = jnp.mean(x, axis=1)                              # (Bt, H) == torch.mean(x, dim=1)
    out = jnp.dot(pooled, wfc_ref[...],
                  preferred_element_type=jnp.float32) + bfc_ref[...]
    out_ref[...] = out.astype(out_ref.dtype)                  # one (Bt, O) store


def attention_based_model(x, params, *, batch_tile=None):
    """x: (B, S, E) float32.  params: dict with fused qkv weights."""
    B, S, E = x.shape
    L, _, H3 = params["wqkv"].shape
    H = H3 // 3
    O = params["wfc"].shape[1]

    Bt = B if batch_tile is None else batch_tile
    assert B % Bt == 0, (B, Bt)

    return pl.pallas_call(
        attention_model_kernel,
        out_shape=jax.ShapeDtypeStruct((B, O), jnp.float32),
        grid_spec=pltpu.PrefetchScalarGridSpec(
            num_scalar_prefetch=0,
            grid=(B // Bt,),
            in_specs=[
                pl.BlockSpec((Bt, S, E), lambda b: (b, 0, 0)),    # x (batched)
                pl.BlockSpec((L, E, H3), lambda b: (0, 0, 0)),    # fused wq|wk|wv
                pl.BlockSpec((L, 1, H3), lambda b: (0, 0, 0)),    # fused bq|bk|bv
                pl.BlockSpec((H, O), lambda b: (0, 0)),           # wfc
                pl.BlockSpec((1, O), lambda b: (0, 0)),           # bfc
            ],
            out_specs=pl.BlockSpec((Bt, O), lambda b: (b, 0)),    # lane-dense 2-D slab
        ),
        compiler_params=pltpu.CompilerParams(
            dimension_semantics=("parallel",)),
    )(x, params["wqkv"], params["bqkv"], params["wfc"], params["bfc"])


def init_params(key, emb_size, hidden_size, output_size, num_layers=NUM_LAYERS):
    """Deterministic init mimicking nn.Linear's U(-1/sqrt(fan_in), 1/sqrt(fan_in)).
    Weights are stored transposed to (in, out) so the kernel does x @ W, and
    Q/K/V weights + biases are fused along the output axis."""
    keys = jax.random.split(key, 8)
    lim_attn = 1.0 / math.sqrt(emb_size)
    lim_fc = 1.0 / math.sqrt(hidden_size)
    u = lambda k, shape, lim: jax.random.uniform(k, shape, jnp.float32, -lim, lim)
    wq = u(keys[0], (num_layers, emb_size, hidden_size), lim_attn)
    bq = u(keys[1], (num_layers, 1, hidden_size), lim_attn)
    wk = u(keys[2], (num_layers, emb_size, hidden_size), lim_attn)
    bk = u(keys[3], (num_layers, 1, hidden_size), lim_attn)
    wv = u(keys[4], (num_layers, emb_size, hidden_size), lim_attn)
    bv = u(keys[5], (num_layers, 1, hidden_size), lim_attn)
    return {
        "wqkv": jnp.concatenate([wq, wk, wv], axis=-1),       # (L, E, 3H)
        "bqkv": jnp.concatenate([bq, bk, bv], axis=-1),       # (L, 1, 3H)
        "wfc": u(keys[6], (hidden_size, output_size), lim_fc),
        "bfc": u(keys[7], (1, output_size), lim_fc),
    }


def reference_forward(x, params):
    """Pure-JAX reference matching the PyTorch forward (fused params sliced back)."""
    scale = 1.0 / math.sqrt(GLOBAL_HIDDEN)
    L, _, H3 = params["wqkv"].shape
    H = H3 // 3
    for l in range(L):
        w, b = params["wqkv"][l], params["bqkv"][l]
        q = x @ w[:, 0 * H:1 * H] + b[:, 0 * H:1 * H]
        k = x @ w[:, 1 * H:2 * H] + b[:, 1 * H:2 * H]
        v = x @ w[:, 2 * H:3 * H] + b[:, 2 * H:3 * H]
        s = jnp.einsum("bqd,bkd->bqk", q, k) * scale
        a = jax.nn.softmax(s, axis=-1)
        x = jnp.einsum("bqk,bkd->bqd", a, v)
    pooled = jnp.mean(x, axis=1)
    return pooled @ params["wfc"] + params["bfc"]


if __name__ == "__main__":
    B, S, E, H, O = 2, 8, 32, 32, 2     # emb_size == hidden_size (required by module)
    key = jax.random.PRNGKey(0)
    kx, kp = jax.random.split(key)
    x = jax.random.normal(kx, (B, S, E), jnp.float32)
    params = init_params(kp, E, H, O)

    out = attention_based_model(x, params)     # single grid step: Bt = B
    out = jax.block_until_ready(out)

    ref = reference_forward(x, params)
    assert out.shape == (B, O), out.shape
    assert jnp.allclose(out, ref, atol=1e-5, rtol=1e-5), (out, ref)
    print("KERNEL_OK")
</pallas_src>

<mosaic_0001>
module attributes {stable_mosaic.version = 11 : i64} {
  func.func @attention_model_kernel(%arg0: i32, %arg1: memref<2x8x32xf32, #tpu.memory_space<vmem>>, %arg2: memref<3x32x96xf32, #tpu.memory_space<vmem>>, %arg3: memref<3x1x96xf32, #tpu.memory_space<vmem>>, %arg4: memref<32x2xf32, #tpu.memory_space<vmem>>, %arg5: memref<1x2xf32, #tpu.memory_space<vmem>>, %arg6: memref<2x2xf32, #tpu.memory_space<vmem>>) attributes {dimension_semantics = [#tpu.dimension_semantics<parallel>], iteration_bounds = array<i64: 1>, scalar_prefetch = 0 : i64, scratch_operands = 0 : i64, tpu.core_type = #tpu.core_type<tc>, window_params = [{transform_indices = @transform_0, window_bounds = array<i64: 2, 8, 32>}, {pipeline_mode = #tpu.pipeline_mode<synchronous>, transform_indices = @transform_1, window_bounds = array<i64: 3, 32, 96>}, {pipeline_mode = #tpu.pipeline_mode<synchronous>, transform_indices = @transform_2, window_bounds = array<i64: 3, 1, 96>}, {pipeline_mode = #tpu.pipeline_mode<synchronous>, transform_indices = @transform_3, window_bounds = array<i64: 32, 2>}, {pipeline_mode = #tpu.pipeline_mode<synchronous>, transform_indices = @transform_4, window_bounds = array<i64: 1, 2>}, {transform_indices = @transform_5, window_bounds = array<i64: 2, 2>}]} {
    %c0 = arith.constant 0 : index
    %c0_0 = arith.constant 0 : index
    %c0_1 = arith.constant 0 : index
    %0 = vector.load %arg1[%c0, %c0_0, %c0_1] : memref<2x8x32xf32, #tpu.memory_space<vmem>>, vector<2x8x32xf32>
    %1 = vector.shape_cast %0 : vector<2x8x32xf32> to vector<16x32xf32>
    %c0_2 = arith.constant 0 : index
    %c0_3 = arith.constant 0 : index
    %c0_4 = arith.constant 0 : index
    %2 = vector.load %arg2[%c0_2, %c0_3, %c0_4] : memref<3x32x96xf32, #tpu.memory_space<vmem>>, vector<1x32x96xf32>
    %3 = vector.shape_cast %2 : vector<1x32x96xf32> to vector<32x96xf32>
    %cst = arith.constant dense<0.000000e+00> : vector<16x96xf32>
    %4 = tpu.matmul %1, %3, %cst {dimension_numbers = #tpu.dot_dimension_numbers<[1], [0], [0], [1], [0, 0, 1, 1], [], []>} : vector<16x32xf32>, vector<32x96xf32>, vector<16x96xf32> -> vector<16x96xf32>
    %c0_5 = arith.constant 0 : index
    %c0_6 = arith.constant 0 : index
    %c0_7 = arith.constant 0 : index
    %5 = vector.load %arg3[%c0_5, %c0_6, %c0_7] : memref<3x1x96xf32, #tpu.memory_space<vmem>>, vector<1x1x96xf32>
    %6 = vector.shape_cast %5 : vector<1x1x96xf32> to vector<1x96xf32>
    %7 = vector.broadcast %6 : vector<1x96xf32> to vector<16x96xf32>
    %8 = arith.addf %4, %7 : vector<16x96xf32>
    %9 = vector.shape_cast %8 : vector<16x96xf32> to vector<2x8x96xf32>
    %10 = vector.extract_strided_slice %9 {offsets = [0, 0, 0], sizes = [2, 8, 32], strides = [1, 1, 1]} : vector<2x8x96xf32> to vector<2x8x32xf32>
    %11 = vector.extract_strided_slice %9 {offsets = [0, 0, 32], sizes = [2, 8, 32], strides = [1, 1, 1]} : vector<2x8x96xf32> to vector<2x8x32xf32>
    %12 = vector.extract_strided_slice %9 {offsets = [0, 0, 64], sizes = [2, 8, 32], strides = [1, 1, 1]} : vector<2x8x96xf32> to vector<2x8x32xf32>
    "tpu.trace_start"() <{level = 10 : i32, message = "bqd,bkd->bqk"}> : () -> ()
    %cst_8 = arith.constant dense<0.000000e+00> : vector<2x8x8xf32>
    %13 = tpu.matmul %10, %11, %cst_8 {dimension_numbers = #tpu.dot_dimension_numbers<[2], [2], [1], [1], [0, 0, 0, 1, 1, 1], [0], [0]>} : vector<2x8x32xf32>, vector<2x8x32xf32>, vector<2x8x8xf32> -> vector<2x8x8xf32>
    "tpu.trace_stop"() : () -> ()
    %cst_9 = arith.constant 0.0883883461 : f32
    %14 = vector.broadcast %cst_9 : f32 to vector<2x8x8xf32>
    %15 = arith.mulf %13, %14 : vector<2x8x8xf32>
    %cst_10 = arith.constant dense<0xFF800000> : vector<2x8xf32>
    %16 = vector.multi_reduction <maximumf>, %15, %cst_10 [2] : vector<2x8x8xf32> to vector<2x8xf32>
    %17 = vector.shape_cast %16 : vector<2x8xf32> to vector<2x8x1xf32>
    %18 = vector.broadcast %17 : vector<2x8x1xf32> to vector<2x8x8xf32>
    %19 = arith.subf %15, %18 : vector<2x8x8xf32>
    %20 = math.exp %19 : vector<2x8x8xf32>
    %cst_11 = arith.constant dense<0.000000e+00> : vector<2x8xf32>
    %21 = vector.multi_reduction <add>, %20, %cst_11 [2] : vector<2x8x8xf32> to vector<2x8xf32>
    %22 = vector.shape_cast %21 : vector<2x8xf32> to vector<2x8x1xf32>
    %23 = vector.broadcast %22 : vector<2x8x1xf32> to vector<2x8x8xf32>
    %24 = arith.divf %20, %23 : vector<2x8x8xf32>
    "tpu.trace_start"() <{level = 10 : i32, message = "bqk,bkd->bqd"}> : () -> ()
    %cst_12 = arith.constant dense<0.000000e+00> : vector<2x8x32xf32>
    %25 = tpu.matmul %24, %12, %cst_12 {dimension_numbers = #tpu.dot_dimension_numbers<[2], [1], [1], [2], [0, 0, 0, 1, 1, 2], [0], [0]>} : vector<2x8x8xf32>, vector<2x8x32xf32>, vector<2x8x32xf32> -> vector<2x8x32xf32>
    "tpu.trace_stop"() : () -> ()
    %26 = vector.shape_cast %25 : vector<2x8x32xf32> to vector<16x32xf32>
    %c1 = arith.constant 1 : index
    %c0_13 = arith.constant 0 : index
    %c0_14 = arith.constant 0 : index
    %27 = vector.load %arg2[%c1, %c0_13, %c0_14] : memref<3x32x96xf32, #tpu.memory_space<vmem>>, vector<1x32x96xf32>
    %28 = vector.shape_cast %27 : vector<1x32x96xf32> to vector<32x96xf32>
    %cst_15 = arith.constant dense<0.000000e+00> : vector<16x96xf32>
    %29 = tpu.matmul %26, %28, %cst_15 {dimension_numbers = #tpu.dot_dimension_numbers<[1], [0], [0], [1], [0, 0, 1, 1], [], []>} : vector<16x32xf32>, vector<32x96xf32>, vector<16x96xf32> -> vector<16x96xf32>
    %c1_16 = arith.constant 1 : index
    %c0_17 = arith.constant 0 : index
    %c0_18 = arith.constant 0 : index
    %30 = vector.load %arg3[%c1_16, %c0_17, %c0_18] : memref<3x1x96xf32, #tpu.memory_space<vmem>>, vector<1x1x96xf32>
    %31 = vector.shape_cast %30 : vector<1x1x96xf32> to vector<1x96xf32>
    %32 = vector.broadcast %31 : vector<1x96xf32> to vector<16x96xf32>
    %33 = arith.addf %29, %32 : vector<16x96xf32>
    %34 = vector.shape_cast %33 : vector<16x96xf32> to vector<2x8x96xf32>
    %35 = vector.extract_strided_slice %34 {offsets = [0, 0, 0], sizes = [2, 8, 32], strides = [1, 1, 1]} : vector<2x8x96xf32> to vector<2x8x32xf32>
    %36 = vector.extract_strided_slice %34 {offsets = [0, 0, 32], sizes = [2, 8, 32], strides = [1, 1, 1]} : vector<2x8x96xf32> to vector<2x8x32xf32>
    %37 = vector.extract_strided_slice %34 {offsets = [0, 0, 64], sizes = [2, 8, 32], strides = [1, 1, 1]} : vector<2x8x96xf32> to vector<2x8x32xf32>
    "tpu.trace_start"() <{level = 10 : i32, message = "bqd,bkd->bqk"}> : () -> ()
    %cst_19 = arith.constant dense<0.000000e+00> : vector<2x8x8xf32>
    %38 = tpu.matmul %35, %36, %cst_19 {dimension_numbers = #tpu.dot_dimension_numbers<[2], [2], [1], [1], [0, 0, 0, 1, 1, 1], [0], [0]>} : vector<2x8x32xf32>, vector<2x8x32xf32>, vector<2x8x8xf32> -> vector<2x8x8xf32>
    "tpu.trace_stop"() : () -> ()
    %cst_20 = arith.constant 0.0883883461 : f32
    %39 = vector.broadcast %cst_20 : f32 to vector<2x8x8xf32>
    %40 = arith.mulf %38, %39 : vector<2x8x8xf32>
    %cst_21 = arith.constant dense<0xFF800000> : vector<2x8xf32>
    %41 = vector.multi_reduction <maximumf>, %40, %cst_21 [2] : vector<2x8x8xf32> to vector<2x8xf32>
    %42 = vector.shape_cast %41 : vector<2x8xf32> to vector<2x8x1xf32>
    %43 = vector.broadcast %42 : vector<2x8x1xf32> to vector<2x8x8xf32>
    %44 = arith.subf %40, %43 : vector<2x8x8xf32>
    %45 = math.exp %44 : vector<2x8x8xf32>
    %cst_22 = arith.constant dense<0.000000e+00> : vector<2x8xf32>
    %46 = vector.multi_reduction <add>, %45, %cst_22 [2] : vector<2x8x8xf32> to vector<2x8xf32>
    %47 = vector.shape_cast %46 : vector<2x8xf32> to vector<2x8x1xf32>
    %48 = vector.broadcast %47 : vector<2x8x1xf32> to vector<2x8x8xf32>
    %49 = arith.divf %45, %48 : vector<2x8x8xf32>
    "tpu.trace_start"() <{level = 10 : i32, message = "bqk,bkd->bqd"}> : () -> ()
    %cst_23 = arith.constant dense<0.000000e+00> : vector<2x8x32xf32>
    %50 = tpu.matmul %49, %37, %cst_23 {dimension_numbers = #tpu.dot_dimension_numbers<[2], [1], [1], [2], [0, 0, 0, 1, 1, 2], [0], [0]>} : vector<2x8x8xf32>, vector<2x8x32xf32>, vector<2x8x32xf32> -> vector<2x8x32xf32>
    "tpu.trace_stop"() : () -> ()
    %51 = vector.shape_cast %50 : vector<2x8x32xf32> to vector<16x32xf32>
    %c2 = arith.constant 2 : index
    %c0_24 = arith.constant 0 : index
    %c0_25 = arith.constant 0 : index
    %52 = vector.load %arg2[%c2, %c0_24, %c0_25] : memref<3x32x96xf32, #tpu.memory_space<vmem>>, vector<1x32x96xf32>
    %53 = vector.shape_cast %52 : vector<1x32x96xf32> to vector<32x96xf32>
    %cst_26 = arith.constant dense<0.000000e+00> : vector<16x96xf32>
    %54 = tpu.matmul %51, %53, %cst_26 {dimension_numbers = #tpu.dot_dimension_numbers<[1], [0], [0], [1], [0, 0, 1, 1], [], []>} : vector<16x32xf32>, vector<32x96xf32>, vector<16x96xf32> -> vector<16x96xf32>
    %c2_27 = arith.constant 2 : index
    %c0_28 = arith.constant 0 : index
    %c0_29 = arith.constant 0 : index
    %55 = vector.load %arg3[%c2_27, %c0_28, %c0_29] : memref<3x1x96xf32, #tpu.memory_space<vmem>>, vector<1x1x96xf32>
    %56 = vector.shape_cast %55 : vector<1x1x96xf32> to vector<1x96xf32>
    %57 = vector.broadcast %56 : vector<1x96xf32> to vector<16x96xf32>
    %58 = arith.addf %54, %57 : vector<16x96xf32>
    %59 = vector.shape_cast %58 : vector<16x96xf32> to vector<2x8x96xf32>
    %60 = vector.extract_strided_slice %59 {offsets = [0, 0, 0], sizes = [2, 8, 32], strides = [1, 1, 1]} : vector<2x8x96xf32> to vector<2x8x32xf32>
    %61 = vector.extract_strided_slice %59 {offsets = [0, 0, 32], sizes = [2, 8, 32], strides = [1, 1, 1]} : vector<2x8x96xf32> to vector<2x8x32xf32>
    %62 = vector.extract_strided_slice %59 {offsets = [0, 0, 64], sizes = [2, 8, 32], strides = [1, 1, 1]} : vector<2x8x96xf32> to vector<2x8x32xf32>
    "tpu.trace_start"() <{level = 10 : i32, message = "bqd,bkd->bqk"}> : () -> ()
    %cst_30 = arith.constant dense<0.000000e+00> : vector<2x8x8xf32>
    %63 = tpu.matmul %60, %61, %cst_30 {dimension_numbers = #tpu.dot_dimension_numbers<[2], [2], [1], [1], [0, 0, 0, 1, 1, 1], [0], [0]>} : vector<2x8x32xf32>, vector<2x8x32xf32>, vector<2x8x8xf32> -> vector<2x8x8xf32>
    "tpu.trace_stop"() : () -> ()
    %cst_31 = arith.constant 0.0883883461 : f32
    %64 = vector.broadcast %cst_31 : f32 to vector<2x8x8xf32>
    %65 = arith.mulf %63, %64 : vector<2x8x8xf32>
    %cst_32 = arith.constant dense<0xFF800000> : vector<2x8xf32>
    %66 = vector.multi_reduction <maximumf>, %65, %cst_32 [2] : vector<2x8x8xf32> to vector<2x8xf32>
    %67 = vector.shape_cast %66 : vector<2x8xf32> to vector<2x8x1xf32>
    %68 = vector.broadcast %67 : vector<2x8x1xf32> to vector<2x8x8xf32>
    %69 = arith.subf %65, %68 : vector<2x8x8xf32>
    %70 = math.exp %69 : vector<2x8x8xf32>
    %cst_33 = arith.constant dense<0.000000e+00> : vector<2x8xf32>
    %71 = vector.multi_reduction <add>, %70, %cst_33 [2] : vector<2x8x8xf32> to vector<2x8xf32>
    %72 = vector.shape_cast %71 : vector<2x8xf32> to vector<2x8x1xf32>
    %73 = vector.broadcast %72 : vector<2x8x1xf32> to vector<2x8x8xf32>
    %74 = arith.divf %70, %73 : vector<2x8x8xf32>
    "tpu.trace_start"() <{level = 10 : i32, message = "bqk,bkd->bqd"}> : () -> ()
    %cst_34 = arith.constant dense<0.000000e+00> : vector<2x8x32xf32>
    %75 = tpu.matmul %74, %62, %cst_34 {dimension_numbers = #tpu.dot_dimension_numbers<[2], [1], [1], [2], [0, 0, 0, 1, 1, 2], [0], [0]>} : vector<2x8x8xf32>, vector<2x8x32xf32>, vector<2x8x32xf32> -> vector<2x8x32xf32>
    "tpu.trace_stop"() : () -> ()
    %cst_35 = arith.constant dense<0.000000e+00> : vector<2x32xf32>
    %76 = vector.multi_reduction <add>, %75, %cst_35 [1] : vector<2x8x32xf32> to vector<2x32xf32>
    %cst_36 = arith.constant 8.000000e+00 : f32
    %77 = vector.broadcast %cst_36 : f32 to vector<2x32xf32>
    %78 = arith.divf %76, %77 : vector<2x32xf32>
    %c0_37 = arith.constant 0 : index
    %c0_38 = arith.constant 0 : index
    %79 = vector.load %arg4[%c0_37, %c0_38] : memref<32x2xf32, #tpu.memory_space<vmem>>, vector<32x2xf32>
    %cst_39 = arith.constant dense<0.000000e+00> : vector<2x2xf32>
    %80 = tpu.matmul %78, %79, %cst_39 {dimension_numbers = #tpu.dot_dimension_numbers<[1], [0], [0], [1], [0, 0, 1, 1], [], []>} : vector<2x32xf32>, vector<32x2xf32>, vector<2x2xf32> -> vector<2x2xf32>
    %c0_40 = arith.constant 0 : index
    %c0_41 = arith.constant 0 : index
    %81 = vector.load %arg5[%c0_40, %c0_41] : memref<1x2xf32, #tpu.memory_space<vmem>>, vector<1x2xf32>
    %82 = vector.broadcast %81 : vector<1x2xf32> to vector<2x2xf32>
    %83 = arith.addf %80, %82 : vector<2x2xf32>
    %c0_42 = arith.constant 0 : index
    %c0_43 = arith.constant 0 : index
    %84 = vector.load %arg6[%c0_42, %c0_43] : memref<2x2xf32, #tpu.memory_space<vmem>>, vector<2x2xf32>
    tpu.vector_store %arg6[%c0_42, %c0_43], %83 {strides = array<i32>} : memref<2x2xf32, #tpu.memory_space<vmem>>, vector<2x2xf32>,
    return
  }
  func.func @transform_0(%arg0: i32) -> (i32, i32, i32) {
    %c0_i32 = arith.constant 0 : i32
    %c0_i32_0 = arith.constant 0 : i32
    %c0_i32_1 = arith.constant 0 : i32
    return %arg0, %c0_i32, %c0_i32_0 : i32, i32, i32
  }
  func.func @transform_1(%arg0: i32) -> (i32, i32, i32) {
    %c0_i32 = arith.constant 0 : i32
    %c0_i32_0 = arith.constant 0 : i32
    %c0_i32_1 = arith.constant 0 : i32
    %c0_i32_2 = arith.constant 0 : i32
    return %c0_i32, %c0_i32_0, %c0_i32_1 : i32, i32, i32
  }
  func.func @transform_2(%arg0: i32) -> (i32, i32, i32) {
    %c0_i32 = arith.constant 0 : i32
    %c0_i32_0 = arith.constant 0 : i32
    %c0_i32_1 = arith.constant 0 : i32
    %c0_i32_2 = arith.constant 0 : i32
    return %c0_i32, %c0_i32_0, %c0_i32_1 : i32, i32, i32
  }
  func.func @transform_3(%arg0: i32) -> (i32, i32) {
    %c0_i32 = arith.constant 0 : i32
    %c0_i32_0 = arith.constant 0 : i32
    %c0_i32_1 = arith.constant 0 : i32
    return %c0_i32, %c0_i32_0 : i32, i32
  }
  func.func @transform_4(%arg0: i32) -> (i32, i32) {
    %c0_i32 = arith.constant 0 : i32
    %c0_i32_0 = arith.constant 0 : i32
    %c0_i32_1 = arith.constant 0 : i32
    return %c0_i32, %c0_i32_0 : i32, i32
  }
  func.func @transform_5(%arg0: i32) -> (i32, i32) {
    %c0_i32 = arith.constant 0 : i32
    %c0_i32_0 = arith.constant 0 : i32
    return %arg0, %c0_i32 : i32, i32
  }
}

</mosaic_0001>

<bundles_post_ra>
// kernel: tpu_custom_call.1
= control target key start
LH: loop header
LB: loop body
LE: loop exit
PB: predicated region body
PF: predicated region fallthrough
CT: control target
= control target key end

     0   :  { %10 = vsyncpa [#allocation3], 0  ;;  %s1905_s0 = inlined_call_operand.vmem [shape: f32[2,8,32], index: 0, kind: input, shape index: {}]   ;;  %s1906_s1 = inlined_call_operand.hbm [shape: f32[3,32,96], index: 1, kind: input, shape index: {}]   ;;  %s1907_s2 = inlined_call_operand.vmem [shape: f32[3,1,96], index: 2, kind: input, shape index: {}]   ;;  %s1908_s3 = inlined_call_operand.vmem [shape: f32[32,2], index: 3, kind: input, shape index: {}]   ;;  %s1909_s4 = inlined_call_operand.vmem [shape: f32[1,2], index: 4, kind: input, shape index: {}]   ;;  %s1910_s5 = inlined_call_operand.hbm [shape: f32[2,2], index: 5, kind: output, shape index: {}]  }
   0x1   :  { %11 = vsyncpa [#allocation4], 0  ;;  %s1723_s18 = smov [#allocation2]   ;;  %s1675_s22 = scalar_lea.hbm %s1906_s1, 1536 }
   0x2   :  { %s19_s19 = sshll.u32 %s1723_s18, 4  ;;  %p1676_p0 = scmp.ne.s32.totalorder %s1906_s1, %s1675_s22  ;;  %s20_s19 = int_to_ptr.vmem [resolvable:$true] %s19_s19 }
   0x3   :  { %p1679_p1 = scmp.lt.u32.totalorder %s1675_s22, %s1906_s1 }
   0x5   :  { %p1681_p2 = pnand %p1679_p1, %p1676_p0 }
   0x7   :  { %1684 = shalt.err (!%p1681_p2)
}
   0x8   :  { %s1685_s27 = scalar_lea.vmem %s20_s19, 1536  ;;  %p1690_p4 = scmp.lt.s32.totalorder %s20_s19, %s20_s19 }
   0x9   :  { %p1686_p3 = scmp.ne.s32.totalorder %s20_s19, %s1685_s27  ;;  %p1691_p5 = scmp.lt.s32.totalorder %s1685_s27, %s1685_s27 }
   0xb   :  { %p1692_p6 = por %p1691_p5, %p1690_p4 }
   0xd   :  { %p1693_p7 = pnand %p1692_p6, %p1686_p3 }
   0xf   :  { %1696 = shalt.err (!%p1693_p7)
}
  0x10   :  { %s1724_s28 = smov 128   ;;  %s1725_s29 = smov 8  }
  0x11   :  { %25 = dma.hbm_to_vmem [thread:$0]  %s1906_s1, 1536, %s20_s19, [#allocation3], %s1724_s28, %s1724_s28, %s1725_s29  }
  0x12   :  { %1719 = dma.done.wait [#allocation3], 1536  }
  0x13   :  { %1720 = vsyncadd [#allocation3], 4294965760  ;;  %vm48_vm0 = vcmask 261120   ;;  %v37_v0 = vld [vmem:[#allocation2] sm:$0xff]  ;;  %v38_v1 = vld [vmem:[#allocation2 + $0x8] sm:$0xff]  ;;  %v1726_v8 = vmov 0.0  }
  0x14   :  { %v39_v2 = vld [vmem:[#allocation2 + $0x10] sm:$0xff]  ;;  %v1612_v3 = vpack.c.bf16 %v38_v1, %v37_v0  ;;  %v40_v4 = vld [vmem:[#allocation2 + $0x18] sm:$0xff]  ;;  %v35_v5 = vld [vmem:[%s1905_s0] sm:$0xff]  ;;  %1519 = vmatprep.subr.mxu1 %v1726_v8  ;;  %vm1727_vm1 = vmmov 0   ;;  %s1728_s12 = smov 96   ;;  %vm286_vm2 = vcmask 64512  }
  0x15   :  { %v1616_v6 = vpack.c.bf16 %v40_v4, %v39_v2  ;;  %1516 = vmatprep.mubr.msk.f32.mxu0 %vm48_vm0, %v35_v5  ;;  %v36_v7 = vld [vmem:[%s1905_s0 + $0x8] sm:$0xff]  ;;  %1521 = vmatprep.mubr.msk.f32.mxu1 %vm1727_vm1, %v1726_v8  ;;  %v1430_v9 = vld [vmem:[%s1907_s2] ss:$0 sm:$0xff]  ;;  %s1729_s0 = smov 64   ;;  %v464_v45 = vld [vmem:[#allocation2 + $0x30] sm:$0xff]  ;;  %vm1339_vm3 = vcmask 1041409  }
  0x16   :  { %1613 = vmatprep.subr.bf16.mxu0 %v1612_v3  ;;  %v462_v35 = vld [vmem:[#allocation2 + $0x20] sm:$0xff]  ;;  %v463_v36 = vld [vmem:[#allocation2 + $0x28] sm:$0xff]  ;;  %v465_v46 = vld [vmem:[#allocation2 + $0x38] sm:$0xff]  ;;  %s1731_s25 = smov [#allocation5]   ;;  %vm1413_vm4 = vcmask 9216  }
  0x17   :  { %1615 = vmatpush3.bf16.msra.mxu0 %v1612_v3  ;;  %v1620_v37 = vpack.c.bf16 %v463_v36, %v462_v35  ;;  %v1624_v47 = vpack.c.bf16 %v465_v46, %v464_v45  ;;  %v1440_v52 = vld [vmem:[%s1907_s2 + $0x1] ss:$0 sm:$0xff]  ;;  %s1421_s26 = sshll.u32 %s1731_s25, 4  ;;  %s1422_s26 = int_to_ptr.vmem [resolvable:$true] %s1421_s26 }
  0x18   :  { %1617 = vmatprep.subr.bf16.mxu0 %v1616_v6  ;;  %s1697_s27 = scalar_lea.vmem %s1422_s26, 32  ;;  %p1702_p9 = scmp.lt.s32.totalorder %s1422_s26, %s1422_s26 }
  0x19   :  { %p1698_p8 = scmp.ne.s32.totalorder %s1422_s26, %s1697_s27  ;;  %p1703_p10 = scmp.lt.s32.totalorder %s1697_s27, %s1697_s27 }
  0x1b   :  { %1619 = vmatpush3.bf16.msra.mxu0 %v1616_v6  ;;  %p1704_p11 = por %p1703_p10, %p1702_p9 }
  0x1c   :  { %1621 = vmatprep.subr.bf16.mxu0 %v1620_v37 }
  0x1d   :  { %p1705_p12 = pnand %p1704_p11, %p1698_p8 }
  0x1e   :  { %1517 = vmatmul.mubr.msk.f32.vlgmr.msra.gmra.mrb[0].mxu0 %vm48_vm0, %v36_v7 }
  0x1f   :  { %1623 = vmatpush3.bf16.msra.mxu0 %v1620_v37 }
  0x20   :  { %1625 = vmatprep.subr.bf16.mxu0 %v1624_v47 }
  0x23   :  { %1627 = vmatpush3.bf16.msra.mxu0 %v1624_v47 }
  0x24   :  { %1560 = vmatprep.subr.mxu0 %v1726_v8 }
  0xf1   :  { %v1518_v10 = vpop.f32.mrb[0].mxu0 }
  0xf2   :  { %v121_v11 = vpop.f32.mrb[1].mxu0  ;;  %v127_v13 = vadd.f32 %v1518_v10, %v1430_v9 }
  0xf3   :  { %v122_v12 = vadd.f32 %v1430_v9, %v121_v11 }
  0xf5   :  { %131 = vrot.lane.b32.xlu0 %v122_v12, %s1728_s12 }
  0xf9   :  { %208 = vrot.lane.b32.xlu0 %v127_v13, %s1728_s12 }
 0x167   :  { %v132_v14 = vpop.permute.xlu0 %131 }
 0x168   :  { %1520 = vmatpush3.xpose.msk.msra.mxu1 %vm48_vm0, %v132_v14 }
 0x169   :  { %1524 = vmatprep.subr.mxu1 %v1726_v8 }
 0x16b   :  { %1522 = vmatmul.mubr.msk.f32.vlgmr.msra.gmra.mrb[0].mxu1 %vm48_vm0, %v122_v12  ;;  %v209_v15 = vpop.permute.xlu0 %208 }
 0x16c   :  { %1525 = vmatpush3.xpose.msk.msra.mxu1 %vm48_vm0, %v209_v15  ;;  %1526 = vmatprep.mubr.msk.f32.mxu1 %vm1727_vm1, %v1726_v8  ;;  %v886_v15 = vld [vmem:[#allocation2 + $0x40] sm:$0xff] }
 0x16d   :  { %1529 = vmatprep.subr.mxu1 %v1726_v8 }
 0x16f   :  { %1527 = vmatmul.mubr.msk.f32.vlgmr.msra.gmra.mrb[2].mxu1 %vm48_vm0, %v127_v13 }
 0x170   :  { %1531 = vmatprep.mubr.msk.f32.mxu1 %vm1727_vm1, %v1726_v8 }
 0x23e   :  { %v203_v16 = vpop.f32.mrb[0].mxu1 }
 0x23f   :  { %v284_v17 = vmul.f32 0.088388346, %v203_v16  ;;  %v1523_v18 = vpop.f32.mrb[1].mxu1  ;;  %v887_v16 = vld [vmem:[#allocation2 + $0x48] sm:$0xff] }
 0x241   :  { %v287_v19 = vsel %vm286_vm2, %v284_v17, -inf }
 0x242   :  { %288 = vmax.xlane.f32.xlu1 %v287_v19  ;;  %v280_v20 = vpop.f32.mrb[2].mxu1 }
 0x243   :  { %v285_v21 = vmul.f32 0.088388346, %v280_v20  ;;  %v1528_v22 = vpop.f32.mrb[3].mxu1 }
 0x245   :  { %v290_v23 = vsel %vm286_vm2, %v285_v21, -inf }
 0x246   :  { %291 = vmax.xlane.f32.xlu1 %v290_v23 }
 0x257   :  { %309 = vrot.lane.b32.xlu1 %v122_v12, %s1729_s0 }
 0x2cf   :  { %v289_v24 = vpop.xlane.xlu1 %288 }
 0x2d0   :  { %v293_v25 = vsub.f32 %v284_v17, %v289_v24  ;;  %v1628_v17 = vpack.c.bf16 %v887_v16, %v886_v15 }
 0x2d2   :  { %v295_v26 = vmul.f32 1.442695, %v293_v25  ;;  %v888_v25 = vld [vmem:[#allocation2 + $0x50] sm:$0xff] }
 0x2d3   :  { %v292_v27 = vpop.xlane.xlu1 %291 }
 0x2d4   :  { %1651 = vpow2.f32 %v295_v26  ;;  %v294_v28 = vsub.f32 %v285_v21, %v292_v27  ;;  %v889_v26 = vld [vmem:[#allocation2 + $0x58] sm:$0xff] }
 0x2d5   :  { %v1632_v27 = vpack.c.bf16 %v889_v26, %v888_v25 }
 0x2d6   :  { %v297_v29 = vmul.f32 1.442695, %v294_v28 }
 0x2d7   :  { %v310_v30 = vpop.permute.xlu1 %309 }
 0x2d8   :  { %1653 = vpow2.f32 %v297_v29  ;;  %1530 = vmatpush3.msra.mxu1 %v310_v30 }
 0x2d9   :  { %1534 = vmatprep.subr.mxu1 %v1726_v8 }
 0x2de   :  { %v1652_v31 = vpop.eup %1651 }
 0x2df   :  { %v299_v32 = vsel %vm286_vm2, %v1652_v31, 0.0 }
 0x2e0   :  { %300 = vadd.xlane.f32.xlu0 %v299_v32  ;;  %v1450_v32 = vld [vmem:[%s1907_s2 + $0x2] ss:$0 sm:$0xff] }
 0x2e2   :  { %v1654_v33 = vpop.eup %1653 }
 0x2e3   :  { %v302_v34 = vsel %vm286_vm2, %v1654_v33, 0.0 }
 0x2e4   :  { %303 = vadd.xlane.f32.xlu1 %v302_v34 }
 0x2f5   :  { %385 = vrot.lane.b32.xlu1 %v127_v13, %s1729_s0 }
 0x36d   :  { %v301_v38 = vpop.xlane.xlu0 %300 }
 0x36e   :  { %1655 = vrcp.f32 %v301_v38 }
 0x371   :  { %v304_v39 = vpop.xlane.xlu1 %303 }
 0x372   :  { %1657 = vrcp.f32 %v304_v39 }
 0x375   :  { %v386_v42 = vpop.permute.xlu1 %385 }
 0x378   :  { %v1656_v40 = vpop.eup %1655 }
 0x379   :  { %v306_v41 = vmul.f32 %v1656_v40, %v1652_v31 }
 0x37b   :  { %1532 = vmatmul.mubr.msk.f32.vlgmr.msra.gmra.mrb[4].mxu1 %vm286_vm2, %v306_v41 }
 0x37c   :  { %v1658_v43 = vpop.eup %1657  ;;  %1535 = vmatpush3.msra.mxu1 %v386_v42  ;;  %1536 = vmatprep.mubr.msk.f32.mxu1 %vm1727_vm1, %v1726_v8 }
 0x37d   :  { %v308_v44 = vmul.f32 %v1658_v43, %v1654_v33  ;;  %1550 = vmatprep.subr.mxu1 %v1726_v8 }
 0x37f   :  { %1537 = vmatmul.mubr.msk.f32.vlgmr.msra.gmra.mrb[6].mxu1 %vm286_vm2, %v308_v44 }
 0x380   :  { %1552 = vmatprep.mubr.msk.f32.mxu1 %vm1727_vm1, %v1726_v8 }
 0x44e   :  { %v381_v48 = vpop.f32.mrb[4].mxu1 }
 0x44f   :  { %v1533_v49 = vpop.f32.mrb[5].mxu1  ;;  %1547 = vmatprep.mubr.msk.f32.mxu0 %vm48_vm0, %v381_v48 }
 0x452   :  { %v457_v50 = vpop.f32.mrb[6].mxu1 }
 0x453   :  { %v1538_v51 = vpop.f32.mrb[7].mxu1  ;;  %1548 = vmatmul.mubr.msk.f32.vlgmr.msra.gmra.mrb[2].mxu0 %vm48_vm0, %v457_v50 }
 0x454   :  { %1562 = vmatprep.mubr.msk.f32.mxu0 %vm1727_vm1, %v1726_v8 }
 0x526   :  { %v1549_v53 = vpop.f32.mrb[2].mxu0 }
 0x527   :  { %v546_v54 = vpop.f32.mrb[3].mxu0  ;;  %v552_v56 = vadd.f32 %v1549_v53, %v1440_v52 }
 0x528   :  { %v547_v55 = vadd.f32 %v1440_v52, %v546_v54 }
 0x52a   :  { %556 = vrot.lane.b32.xlu1 %v547_v55, %s1728_s12 }
 0x52e   :  { %633 = vrot.lane.b32.xlu1 %v552_v56, %s1728_s12 }
 0x59c   :  { %v557_v57 = vpop.permute.xlu1 %556 }
 0x59d   :  { %1551 = vmatpush3.xpose.msk.msra.mxu1 %vm48_vm0, %v557_v57 }
 0x59e   :  { %1555 = vmatprep.subr.mxu1 %v1726_v8 }
 0x5a0   :  { %1553 = vmatmul.mubr.msk.f32.vlgmr.msra.gmra.mrb[8].mxu1 %vm48_vm0, %v547_v55  ;;  %v634_v58 = vpop.permute.xlu1 %633 }
 0x5a1   :  { %1556 = vmatpush3.xpose.msk.msra.mxu1 %vm48_vm0, %v634_v58  ;;  %1557 = vmatprep.mubr.msk.f32.mxu1 %vm1727_vm1, %v1726_v8 }
 0x5a2   :  { %1565 = vmatprep.subr.mxu1 %v1726_v8 }
 0x5a4   :  { %1558 = vmatmul.mubr.msk.f32.vlgmr.msra.gmra.mrb[10].mxu1 %vm48_vm0, %v552_v56 }
 0x5a5   :  { %1567 = vmatprep.mubr.msk.f32.mxu1 %vm1727_vm1, %v1726_v8 }
 0x673   :  { %v628_v59 = vpop.f32.mrb[8].mxu1 }
 0x674   :  { %v709_v60 = vmul.f32 0.088388346, %v628_v59  ;;  %v1554_v61 = vpop.f32.mrb[9].mxu1 }
 0x676   :  { %v711_v62 = vsel %vm286_vm2, %v709_v60, -inf }
 0x677   :  { %712 = vmax.xlane.f32.xlu0 %v711_v62  ;;  %v705_v63 = vpop.f32.mrb[10].mxu1 }
 0x678   :  { %v710_v0 = vmul.f32 0.088388346, %v705_v63  ;;  %v1559_v1 = vpop.f32.mrb[11].mxu1 }
 0x679   :  { %v1326_v1 = vld [vmem:[%s1908_s3] sm:$0xff] }
 0x67a   :  { %v714_v2 = vsel %vm286_vm2, %v710_v0, -inf }
 0x67b   :  { %715 = vmax.xlane.f32.xlu1 %v714_v2  ;;  %v1327_v2 = vld [vmem:[%s1908_s3 + $0x8] sm:$0xff] }
 0x68d   :  { %733 = vrot.lane.b32.xlu0 %v547_v55, %s1729_s0 }
 0x704   :  { %v713_v3 = vpop.xlane.xlu0 %712 }
 0x705   :  { %v717_v4 = vsub.f32 %v709_v60, %v713_v3  ;;  %v1637_v3 = vpack.c.bf16 %v1327_v2, %v1326_v1 }
 0x707   :  { %v719_v5 = vmul.f32 1.442695, %v717_v4  ;;  %v1730_v4 = vmov 0.0|0.0  }
 0x708   :  { %v734_v6 = vpop.permute.xlu0 %733  ;;  %v716_v7 = vpop.xlane.xlu1 %715 }
 0x709   :  { %1659 = vpow2.f32 %v719_v5  ;;  %v718_v9 = vsub.f32 %v710_v0, %v716_v7  ;;  %1561 = vmatpush3.msra.mxu0 %v734_v6  ;;  %v1329_v5 = vld [vmem:[%s1908_s3 + $0x18] sm:$0xff] }
 0x70a   :  { %1629 = vmatprep.subr.bf16.mxu0 %v1628_v17 }
 0x70b   :  { %v721_v10 = vmul.f32 1.442695, %v718_v9 }
 0x70d   :  { %1661 = vpow2.f32 %v721_v10 }
 0x713   :  { %v1660_v11 = vpop.eup %1659 }
 0x714   :  { %v723_v12 = vsel %vm286_vm2, %v1660_v11, 0.0 }
 0x715   :  { %724 = vadd.xlane.f32.xlu0 %v723_v12 }
 0x717   :  { %v1662_v13 = vpop.eup %1661 }
 0x718   :  { %v726_v14 = vsel %vm286_vm2, %v1662_v13, 0.0 }
 0x719   :  { %727 = vadd.xlane.f32.xlu0 %v726_v14 }
 0x72f   :  { %809 = vrot.lane.b32.xlu0 %v552_v56, %s1729_s0 }
 0x7a2   :  { %v725_v18 = vpop.xlane.xlu0 %724 }
 0x7a3   :  { %1663 = vrcp.f32 %v725_v18 }
 0x7a6   :  { %v728_v19 = vpop.xlane.xlu0 %727 }
 0x7a7   :  { %1665 = vrcp.f32 %v728_v19 }
 0x7aa   :  { %v810_v20 = vpop.permute.xlu0 %809 }
 0x7ab   :  { %1566 = vmatpush3.msra.mxu1 %v810_v20 }
 0x7ac   :  { %1581 = vmatprep.subr.mxu1 %v1726_v8 }
 0x7ad   :  { %v1664_v21 = vpop.eup %1663 }
 0x7ae   :  { %v730_v22 = vmul.f32 %v1664_v21, %v1660_v11 }
 0x7b0   :  { %1563 = vmatmul.mubr.msk.f32.vlgmr.msra.gmra.mrb[4].mxu0 %vm286_vm2, %v730_v22 }
 0x7b1   :  { %v1666_v23 = vpop.eup %1665  ;;  %1631 = vmatpush3.bf16.msra.mxu0 %v1628_v17 }
 0x7b2   :  { %v732_v24 = vmul.f32 %v1666_v23, %v1662_v13  ;;  %1633 = vmatprep.subr.bf16.mxu0 %v1632_v27 }
 0x7b4   :  { %1568 = vmatmul.mubr.msk.f32.vlgmr.msra.gmra.mrb[12].mxu1 %vm286_vm2, %v732_v24 }
 0x7b5   :  { %1583 = vmatprep.mubr.msk.f32.mxu1 %vm1727_vm1, %v1726_v8  ;;  %1635 = vmatpush3.bf16.msra.mxu0 %v1632_v27 }
 0x7b6   :  { %1591 = vmatprep.subr.mxu0 %v1726_v8 }
 0x883   :  { %v805_v28 = vpop.f32.mrb[4].mxu0 }
 0x884   :  { %v1564_v29 = vpop.f32.mrb[5].mxu0  ;;  %1578 = vmatprep.mubr.msk.f32.mxu0 %vm48_vm0, %v805_v28 }
 0x885   :  { %v1459_v29 = vld [vmem:[%s1909_s4] ss:$0 sm:$0xff] }
 0x887   :  { %v881_v30 = vpop.f32.mrb[12].mxu1 }
 0x888   :  { %v1569_v31 = vpop.f32.mrb[13].mxu1  ;;  %1579 = vmatmul.mubr.msk.f32.vlgmr.msra.gmra.mrb[6].mxu0 %vm48_vm0, %v881_v30 }
 0x889   :  { %1593 = vmatprep.mubr.msk.f32.mxu0 %vm1727_vm1, %v1726_v8 }
 0x95b   :  { %v1580_v33 = vpop.f32.mrb[6].mxu0 }
 0x95c   :  { %v976_v34 = vadd.f32 %v1580_v33, %v1450_v32  ;;  %v970_v35 = vpop.f32.mrb[7].mxu0 }
 0x95d   :  { %v971_v36 = vadd.f32 %v1450_v32, %v970_v35 }
 0x95e   :  { %1057 = vrot.lane.b32.xlu1 %v976_v34, %s1728_s12 }
 0x95f   :  { %980 = vrot.lane.b32.xlu0 %v971_v36, %s1728_s12 }
 0x9d0   :  { %v1058_v38 = vpop.permute.xlu1 %1057 }
 0x9d1   :  { %v981_v37 = vpop.permute.xlu0 %980 }
 0x9d2   :  { %1582 = vmatpush3.xpose.msk.msra.mxu1 %vm48_vm0, %v981_v37 }
 0x9d3   :  { %1586 = vmatprep.subr.mxu1 %v1726_v8 }
 0x9d5   :  { %1584 = vmatmul.mubr.msk.f32.vlgmr.msra.gmra.mrb[14].mxu1 %vm48_vm0, %v971_v36 }
 0x9d6   :  { %1587 = vmatpush3.xpose.msk.msra.mxu1 %vm48_vm0, %v1058_v38  ;;  %1588 = vmatprep.mubr.msk.f32.mxu1 %vm1727_vm1, %v1726_v8 }
 0x9d7   :  { %1596 = vmatprep.subr.mxu1 %v1726_v8 }
 0x9d9   :  { %1589 = vmatmul.mubr.msk.f32.vlgmr.msra.gmra.mrb[16].mxu1 %vm48_vm0, %v976_v34 }
 0x9da   :  { %1598 = vmatprep.mubr.msk.f32.mxu1 %vm1727_vm1, %v1726_v8 }
 0xaa8   :  { %v1052_v39 = vpop.f32.mrb[14].mxu1 }
 0xaa9   :  { %v1133_v40 = vmul.f32 0.088388346, %v1052_v39  ;;  %v1585_v41 = vpop.f32.mrb[15].mxu1 }
 0xaab   :  { %v1135_v42 = vsel %vm286_vm2, %v1133_v40, -inf }
 0xaac   :  { %1136 = vmax.xlane.f32.xlu0 %v1135_v42  ;;  %v1129_v43 = vpop.f32.mrb[16].mxu1 }
 0xaad   :  { %v1134_v44 = vmul.f32 0.088388346, %v1129_v43  ;;  %v1590_v45 = vpop.f32.mrb[17].mxu1 }
 0xaaf   :  { %v1138_v46 = vsel %vm286_vm2, %v1134_v44, -inf }
 0xab0   :  { %1139 = vmax.xlane.f32.xlu1 %v1138_v46 }
 0xac1   :  { %1233 = vrot.lane.b32.xlu1 %v976_v34, %s1729_s0 }
 0xb39   :  { %v1137_v47 = vpop.xlane.xlu0 %1136 }
 0xb3a   :  { %v1141_v48 = vsub.f32 %v1133_v40, %v1137_v47 }
 0xb3c   :  { %v1143_v49 = vmul.f32 1.442695, %v1141_v48 }
 0xb3d   :  { %v1140_v50 = vpop.xlane.xlu1 %1139 }
 0xb3e   :  { %1667 = vpow2.f32 %v1143_v49  ;;  %v1142_v51 = vsub.f32 %v1134_v44, %v1140_v50 }
 0xb40   :  { %v1145_v52 = vmul.f32 1.442695, %v1142_v51 }
 0xb41   :  { %v1234_v53 = vpop.permute.xlu1 %1233 }
 0xb42   :  { %1669 = vpow2.f32 %v1145_v52  ;;  %1597 = vmatpush3.msra.mxu1 %v1234_v53 }
 0xb48   :  { %v1668_v54 = vpop.eup %1667 }
 0xb49   :  { %v1147_v55 = vsel %vm286_vm2, %v1668_v54, 0.0 }
 0xb4a   :  { %1148 = vadd.xlane.f32.xlu0 %v1147_v55 }
 0xb4c   :  { %v1670_v56 = vpop.eup %1669 }
 0xb4d   :  { %v1150_v57 = vsel %vm286_vm2, %v1670_v56, 0.0 }
 0xb4e   :  { %1151 = vadd.xlane.f32.xlu0 %v1150_v57 }
 0xb64   :  { %1157 = vrot.lane.b32.xlu0 %v971_v36, %s1729_s0 }
 0xbd7   :  { %v1149_v58 = vpop.xlane.xlu0 %1148 }
 0xbd8   :  { %1671 = vrcp.f32 %v1149_v58 }
 0xbdb   :  { %v1152_v59 = vpop.xlane.xlu0 %1151 }
 0xbdc   :  { %1673 = vrcp.f32 %v1152_v59 }
 0xbdf   :  { %v1158_v60 = vpop.permute.xlu0 %1157 }
 0xbe0   :  { %1592 = vmatpush3.msra.mxu0 %v1158_v60 }
 0xbe1   :  { %1636 = vmatprep.subr.bf16.mxu0 %v1730_v4 }
 0xbe2   :  { %v1672_v61 = vpop.eup %1671 }
 0xbe3   :  { %v1154_v62 = vmul.f32 %v1672_v61, %v1668_v54 }
 0xbe5   :  { %1594 = vmatmul.mubr.msk.f32.vlgmr.msra.gmra.mrb[8].mxu0 %vm286_vm2, %v1154_v62 }
 0xbe6   :  { %v1674_v63 = vpop.eup %1673  ;;  %1609 = vmatprep.mubr.msk.f32.mxu0 %vm1727_vm1, %v1726_v8  ;;  %1638 = vmatpush3.bf16.msra.mxu0 %v1637_v3  ;;  %v1328_v8 = vld [vmem:[%s1908_s3 + $0x10] sm:$0xff] }
 0xbe7   :  { %v1156_v0 = vmul.f32 %v1674_v63, %v1670_v56  ;;  %1639 = vmatprep.subr.bf16.mxu0 %v1730_v4  ;;  %v1640_v6 = vpack.c.bf16 %v1329_v5, %v1328_v8 }
 0xbe9   :  { %1599 = vmatmul.mubr.msk.f32.vlgmr.msra.gmra.mrb[18].mxu1 %vm286_vm2, %v1156_v0 }
 0xbea   :  { %1641 = vmatpush3.bf16.msra.mxu0 %v1640_v6 }
 0xcb8   :  { %v1229_v7 = vpop.f32.mrb[8].mxu0 }
 0xcb9   :  { %v1309_v9 = vsel %vm48_vm0, %v1229_v7, 0.0  ;;  %v1595_v10 = vpop.f32.mrb[9].mxu0 }
 0xcba   :  { %v1310_v11 = vrot.slane %v1309_v9, 4 }
 0xcbc   :  { %v1311_v12 = vadd.f32 %v1310_v11, %v1309_v9  ;;  %v1305_v13 = vpop.f32.mrb[18].mxu1 }
 0xcbd   :  { %v1316_v14 = vsel %vm48_vm0, %v1305_v13, 0.0  ;;  %v1600_v15 = vpop.f32.mrb[19].mxu1 }
 0xcbe   :  { %v1312_v16 = vrot.slane %v1311_v12, 2  ;;  %v1317_v17 = vrot.slane %v1316_v14, 4 }
 0xcc0   :  { %v1313_v18 = vadd.f32 %v1312_v16, %v1311_v12  ;;  %v1318_v19 = vadd.f32 %v1317_v17, %v1316_v14 }
 0xcc2   :  { %v1314_v20 = vrot.slane %v1313_v18, 1  ;;  %v1319_v21 = vrot.slane %v1318_v19, 2 }
 0xcc4   :  { %v1320_v22 = vadd.f32 %v1319_v21, %v1318_v19  ;;  %v1315_v23 = vadd.f32 %v1314_v20, %v1313_v18 }
 0xcc6   :  { %v1321_v24 = vrot.slane %v1320_v22, 1  ;;  %v1324_v26 = vmul.f32 0.125, %v1315_v23 }
 0xcc8   :  { %v1322_v25 = vadd.f32 %v1321_v24, %v1320_v22 }
 0xcca   :  { %v1325_v27 = vmul.f32 0.125, %v1322_v25 }
 0xccc   :  { %v1340_v28 = vsel %vm1339_vm3, %v1325_v27, %v1324_v26 }
 0xccd   :  { %1610 = vmatmul.mubr.msk.f32.vlgmr.msra.gmra.mrb[10].mxu0 %vm48_vm0, %v1340_v28 }
 0xda0   :  { %v1409_v30 = vpop.f32.mrb[10].mxu0 }
 0xda1   :  { %v1410_v31 = vadd.f32 %v1459_v29, %v1409_v30  ;;  %v1611_v32 = vpop.f32.mrb[11].mxu0 }
 0xda3   :  { %1414 = vst.msk [vmem:[#allocation5] sm:$0x3] %vm1413_vm4, %v1410_v31 }
 0xda4   :  { %1708 = shalt.err (!%p1705_p12)
}
 0xda5   :  { %s1709_s30 = scalar_lea.hbm %s1910_s5, 32 }
 0xda6   :  { %p1710_p13 = scmp.ne.s32.totalorder %s1910_s5, %s1709_s30  ;;  %p1713_p0 = scmp.lt.u32.totalorder %s1709_s30, %s1910_s5 }
 0xda8   :  { %p1715_p1 = pnand %p1713_p0, %p1710_p13 }
 0xdaa   :  { %1718 = shalt.err (!%p1715_p1)
}
 0xdab   :  { %1424 = dma.vmem_to_hbm [thread:$0]  %s1422_s26, 32, %s1910_s5, [#allocation4]  }
 0xdac   :  { %1721 = dma.done.wait [#allocation4], 32  }
 0xdad   :  { %1722 = vsyncadd [#allocation4], 4294967264 }
 0xdae   :  { %1428 = vsyncpa [#allocation3], 1 }
 0xdaf   :  { %1429 = vsyncpa [#allocation4], 1 }

</bundles_post_ra>
